<compile_context>
chip_gen: v5e
topology: v5e:2x2
jax: 0.10.0
libtpu: 0.0.40
codegen_flags: <defaults>
</compile_context>

<pallas_src>
import functools

import jax
import jax.numpy as jnp
from jax import lax
from jax.experimental import pallas as pl
from jax.experimental.pallas import tpu as pltpu

LANE = 128
BASE_SUBLANE = 8          # sublanes per 32-bit vreg row
MAX_TILE_GROUPS = 1024    # 4 KiB per group -> 4 MiB per input block
VMEM_LIMIT_BYTES = 40 * 1024 * 1024  # explicit: > 16 MiB of pipeline buffers, < v7x 64 MiB


def _partial_sum_kernel(pred_ref, true_ref, out_ref, *, tile_g, groups_full,
                        need_mask):
    """Per-tile partial sums of max(0, 1 - y_true*y_pred)^2.

    pred_ref/true_ref: (tile_g, sublane, 128) blocks in native dtype.
    out_ref:           (1, sublane, 128) f32 partial sum for this grid tile.
    All elements fed to this kernel are valid except possibly trailing groups
    of a partial last grid block (only when need_mask is True).
    """
    p = pred_ref[...].astype(jnp.float32)
    t = true_ref[...].astype(jnp.float32)
    margin = jnp.maximum(0.0, 1.0 - t * p)
    sq = margin * margin

    if not need_mask:
        # Fast path: every group in every tile is valid -> pure VALU adds.
        out_ref[...] = jnp.sum(sq, axis=0, keepdims=True)
    else:
        i = pl.program_id(0)
        last = pl.num_programs(0) - 1

        @pl.when(i != last)
        def _():
            out_ref[...] = jnp.sum(sq, axis=0, keepdims=True)

        @pl.when(i == last)
        def _():
            # Group-level mask: zero out groups past the end of the array
            # (the DMA'd padding of the partial last block is undefined).
            g_idx = lax.broadcasted_iota(jnp.int32, sq.shape, 0)
            valid = (i * tile_g + g_idx) < groups_full
            out_ref[...] = jnp.sum(jnp.where(valid, sq, 0.0), axis=0,
                                   keepdims=True)


def squared_hinge_loss_mean(y_pred, y_true):
    """mean(max(0, 1 - y_true * y_pred) ** 2) via a Pallas TPU kernel."""
    assert y_pred.shape == y_true.shape, (y_pred.shape, y_true.shape)
    n = int(y_pred.size)
    if n == 0:
        return jnp.float32(0.0)

    pred_flat = y_pred.reshape(-1)
    true_flat = y_true.reshape(-1)

    # Dtype-dependent packing: one group is always 4 KiB.
    itemsize = max(jnp.dtype(y_pred.dtype).itemsize,
                   jnp.dtype(y_true.dtype).itemsize)
    itemsize = min(4, max(1, itemsize))
    sublane = BASE_SUBLANE * (4 // itemsize)   # 8 (f32) / 16 (bf16) / 32 (i8)
    block_elems = sublane * LANE

    groups_full = n // block_elems
    main_n = groups_full * block_elems
    tail = n - main_n

    main_sum = jnp.float32(0.0)
    if groups_full > 0:
        # Aligned prefix: zero-copy reshape to a lane-dense 3-D slab.
        pred3 = pred_flat[:main_n].reshape(groups_full, sublane, LANE)
        true3 = true_flat[:main_n].reshape(groups_full, sublane, LANE)

        # Big tiles for HBM roofline, but keep num_tiles >= 2 whenever
        # possible so both v7x TensorCores get work on the parallel axis.
        tile_g = max(1, min(MAX_TILE_GROUPS, pl.cdiv(groups_full, 2)))
        num_tiles = pl.cdiv(groups_full, tile_g)
        need_mask = (groups_full % tile_g) != 0

        kernel = functools.partial(
            _partial_sum_kernel,
            tile_g=tile_g, groups_full=groups_full, need_mask=need_mask)

        bytes_accessed = (main_n * (pred3.dtype.itemsize
                                    + true3.dtype.itemsize)
                          + num_tiles * sublane * LANE * 4)
        cost = pl.CostEstimate(flops=5 * main_n, transcendentals=0,
                               bytes_accessed=bytes_accessed)

        partials = pl.pallas_call(
            kernel,
            out_shape=jax.ShapeDtypeStruct((num_tiles, sublane, LANE),
                                           jnp.float32),
            grid=(num_tiles,),
            in_specs=[
                pl.BlockSpec((tile_g, sublane, LANE), lambda i: (i, 0, 0)),
                pl.BlockSpec((tile_g, sublane, LANE), lambda i: (i, 0, 0)),
            ],
            out_specs=pl.BlockSpec((1, sublane, LANE), lambda i: (i, 0, 0)),
            compiler_params=pltpu.CompilerParams(
                dimension_semantics=("parallel",),
                vmem_limit_bytes=VMEM_LIMIT_BYTES),
            cost_estimate=cost,
        )(pred3, true3)
        main_sum = jnp.sum(partials)

    if tail > 0:
        # Tiny ragged tail (< one 4 KiB group): trivial XLA expression,
        # avoids any full-array pad/copy of the inputs.
        pt = pred_flat[main_n:].astype(jnp.float32)
        tt = true_flat[main_n:].astype(jnp.float32)
        mt = jnp.maximum(0.0, 1.0 - tt * pt)
        total = main_sum + jnp.sum(mt * mt)
    else:
        total = main_sum

    return total / jnp.float32(n)


if __name__ == "__main__":
    key = jax.random.PRNGKey(0)
    k1, k2, k3, k4, k5, k6, k7, k8 = jax.random.split(key, 8)

    def ref_loss(yp, yt):
        ypf = yp.astype(jnp.float32)
        ytf = yt.astype(jnp.float32)
        return jnp.mean(jnp.maximum(0.0, 1.0 - ytf * ypf) ** 2)

    # Case 1: NCHW-style prediction tensor (aligned, 2 tiles, no mask).
    x_shape = (2, 4, 16, 16)
    y_pred = jax.random.normal(k1, x_shape, dtype=jnp.float32)
    y_true = jnp.where(jax.random.bernoulli(k2, 0.5, x_shape),
                       1.0, -1.0).astype(jnp.float32)
    loss = squared_hinge_loss_mean(y_pred, y_true)
    jax.block_until_ready(loss)
    assert jnp.allclose(loss, ref_loss(y_pred, y_true),
                        rtol=1e-5, atol=1e-6), loss

    # Case 2: tiny ragged size (pure XLA-tail path, no pallas_call).
    r_shape = (3, 5, 7)
    yp2 = jax.random.normal(k3, r_shape, dtype=jnp.float32)
    yt2 = jnp.where(jax.random.bernoulli(k4, 0.5, r_shape),
                    1.0, -1.0).astype(jnp.float32)
    loss2 = squared_hinge_loss_mean(yp2, yt2)
    jax.block_until_ready(loss2)
    assert jnp.allclose(loss2, ref_loss(yp2, yt2),
                        rtol=1e-5, atol=1e-6), loss2

    # Case 3: exercises the partial-last-grid-block mask + XLA tail.
    yp3 = jax.random.normal(k5, (3100,), dtype=jnp.float32)
    yt3 = jnp.where(jax.random.bernoulli(k6, 0.5, (3100,)),
                    1.0, -1.0).astype(jnp.float32)
    loss3 = squared_hinge_loss_mean(yp3, yt3)
    jax.block_until_ready(loss3)
    assert jnp.allclose(loss3, ref_loss(yp3, yt3),
                        rtol=1e-5, atol=1e-6), loss3

    # Case 4: bf16 inputs (packed 16-sublane layout path).
    yp4 = jax.random.normal(k7, (4, 1024), dtype=jnp.float32).astype(jnp.bfloat16)
    yt4 = jnp.where(jax.random.bernoulli(k8, 0.5, (4, 1024)),
                    1.0, -1.0).astype(jnp.bfloat16)
    loss4 = squared_hinge_loss_mean(yp4, yt4)
    jax.block_until_ready(loss4)
    assert jnp.allclose(loss4, ref_loss(yp4, yt4),
                        rtol=1e-4, atol=1e-5), loss4

    print("KERNEL_OK")
</pallas_src>

<mosaic_0001>
module attributes {stable_mosaic.version = 11 : i64} {
  func.func @_partial_sum_kernel(%arg0: i32, %arg1: memref<1x8x128xf32, #tpu.memory_space<vmem>>, %arg2: memref<1x8x128xf32, #tpu.memory_space<vmem>>, %arg3: memref<1x8x128xf32, #tpu.memory_space<vmem>>) attributes {dimension_semantics = [#tpu.dimension_semantics<parallel>], iteration_bounds = array<i64: 2>, scalar_prefetch = 0 : i64, scratch_operands = 0 : i64, tpu.core_type = #tpu.core_type<tc>, window_params = [{transform_indices = @transform_0, window_bounds = array<i64: 1, 8, 128>}, {transform_indices = @transform_1, window_bounds = array<i64: 1, 8, 128>}, {transform_indices = @transform_2, window_bounds = array<i64: 1, 8, 128>}]} {
    %c0 = arith.constant 0 : index
    %c0_0 = arith.constant 0 : index
    %c0_1 = arith.constant 0 : index
    %0 = vector.load %arg1[%c0, %c0_0, %c0_1] : memref<1x8x128xf32, #tpu.memory_space<vmem>>, vector<1x8x128xf32>
    %c0_2 = arith.constant 0 : index
    %c0_3 = arith.constant 0 : index
    %c0_4 = arith.constant 0 : index
    %1 = vector.load %arg2[%c0_2, %c0_3, %c0_4] : memref<1x8x128xf32, #tpu.memory_space<vmem>>, vector<1x8x128xf32>
    %2 = arith.mulf %1, %0 : vector<1x8x128xf32>
    %cst = arith.constant 1.000000e+00 : f32
    %3 = vector.broadcast %cst : f32 to vector<1x8x128xf32>
    %4 = arith.subf %3, %2 : vector<1x8x128xf32>
    %cst_5 = arith.constant 0.000000e+00 : f32
    %5 = vector.broadcast %cst_5 : f32 to vector<1x8x128xf32>
    %6 = arith.maximumf %5, %4 : vector<1x8x128xf32>
    %7 = arith.mulf %6, %6 : vector<1x8x128xf32>
    %cst_6 = arith.constant dense<0.000000e+00> : vector<8x128xf32>
    %8 = vector.multi_reduction <add>, %7, %cst_6 [0] : vector<1x8x128xf32> to vector<8x128xf32>
    %9 = vector.shape_cast %8 : vector<8x128xf32> to vector<1x8x128xf32>
    %c0_7 = arith.constant 0 : index
    %c0_8 = arith.constant 0 : index
    %c0_9 = arith.constant 0 : index
    %10 = vector.load %arg3[%c0_7, %c0_8, %c0_9] : memref<1x8x128xf32, #tpu.memory_space<vmem>>, vector<1x8x128xf32>
    tpu.vector_store %arg3[%c0_7, %c0_8, %c0_9], %9 {strides = array<i32>} : memref<1x8x128xf32, #tpu.memory_space<vmem>>, vector<1x8x128xf32>,
    return
  }
  func.func @transform_0(%arg0: i32) -> (i32, i32, i32) {
    %c0_i32 = arith.constant 0 : i32
    %c0_i32_0 = arith.constant 0 : i32
    %c0_i32_1 = arith.constant 0 : i32
    return %arg0, %c0_i32, %c0_i32_0 : i32, i32, i32
  }
  func.func @transform_1(%arg0: i32) -> (i32, i32, i32) {
    %c0_i32 = arith.constant 0 : i32
    %c0_i32_0 = arith.constant 0 : i32
    %c0_i32_1 = arith.constant 0 : i32
    return %arg0, %c0_i32, %c0_i32_0 : i32, i32, i32
  }
  func.func @transform_2(%arg0: i32) -> (i32, i32, i32) {
    %c0_i32 = arith.constant 0 : i32
    %c0_i32_0 = arith.constant 0 : i32
    %c0_i32_1 = arith.constant 0 : i32
    return %arg0, %c0_i32, %c0_i32_0 : i32, i32, i32
  }
}

</mosaic_0001>

<bundles_post_ra>
// kernel: tpu_custom_call.1
= control target key start
LH: loop header
LB: loop body
LE: loop exit
PB: predicated region body
PF: predicated region fallthrough
CT: control target
= control target key end

     0   :  { %7 = vsyncpa [#allocation3], 0  ;;  %s690_s0 = inlined_call_operand.hbm [shape: f32[2,8,128], index: 0, kind: input, shape index: {}]   ;;  %s691_s1 = inlined_call_operand.hbm [shape: f32[2,8,128], index: 1, kind: input, shape index: {}]   ;;  %s692_s2 = inlined_call_operand.hbm [shape: f32[2,8,128], index: 2, kind: output, shape index: {}]  }
   0x1   :  { %9 = vsyncpa [#allocation3 + $0x1], 0 }
   0x2   :  { %10 = vsyncpa [#allocation6], 0 }
   0x3   :  { %12 = vsyncpa [#allocation6 + $0x1], 0 }
   0x4   :  { %13 = vsyncpa [#allocation4], 0 }
   0x5   :  { %15 = vsyncpa [#allocation4 + $0x1], 0  ;;  %s530_s9 = smov 0   ;;  %s532_s10 = smov 0  }
   0x6   :  { %s534_s11 = smov 0   ;;  %s536_s12 = smov 0  }
   0x7 LB: > { %s551_s13 = sadd.s32 4294967295, %s513_s12   ;;  %s317_s14 = sadd.s32 4294967294, %s513_s12   ;;  %s513_s12 = sphi %s536_s12, %s703_s12   ;;  %s509_s11 = sphi %s534_s11, %s702_s11   ;;  %s505_s10 = sphi %s532_s10, %s701_s10   ;;  %s501_s9 = sphi %s530_s9, %s700_s9  }
   0x8   : > { %s555_s15 = sadd.s32 1, %s513_s12   ;;  %s28_s16 = sadd.s32 1, %s509_s11 }
   0x9   : > { %s25_s17 = ssub.s32 %s513_s12, %s555_s15  ;;  %p35_p0 = scmp.ne.s32.totalorder %s509_s11, %s505_s10 }
   0xa   : > { %p26_p1 = scmp.eq.s32.totalorder %s25_s17, 0  ;;  %p36_p2 = scmp.eq.s32.totalorder %s513_s12, 0 }
   0xb   : > { %p41_p3 = scmp.ne.s32.totalorder %s505_s10, %s501_s9  ;;  %p42_p4 = scmp.eq.s32.totalorder %s551_s13, 0 }
   0xc   : > { %s567_s18 = scalar_select %p26_p1, %s509_s11, %s28_s16  }
   0xd   : > { %p569_p5 = por %p36_p2, %p35_p0  ;;  %p573_p6 = por %p42_p4, %p41_p3 }
   0xe   : > { %p91_p7 = scmp.eq.s32.totalorder %s551_s13, 1  ;;  %p97_p8 = scmp.eq.s32.totalorder %s317_s14, 1 }
   0xf   : > { %p349_p10 = scmp.lt.s32.totalorder %s513_s12, 2  ;;  %s589_s23 = sand.u32 1, %s509_s11  }
  0x10   : > { %p580_p11 = por %p91_p7, %p35_p0  ;;  %p584_p12 = por %p97_p8, %p41_p3 }
  0x11   : > { %s321_s24 = sshll.u32 %s513_s12, 3  ;;  %s320_s25 = sshll.u32 %s589_s23, 3 }
  0x12   : > { %s125_s28 = scalar_lea.hbm %s690_s0, %s321_s24  ;;  %s121_s30 = scalar_lea.vmem [#allocation2], %s320_s25 }
  0x13   : > { %s127_s29 = sshll.u32 %s125_s28, 4  ;;  %s129_s3 = sshll.u32 %s121_s30, 4  ;;  %s128_s29 = int_to_ptr.hbm [resolvable:$true] %s127_s29  ;;  %s130_s3 = int_to_ptr.vmem [resolvable:$true] %s129_s3 }
  0x14   : > { %p598_p13 = pnand %p349_p10, %p569_p5  ;;  %p324_p0 = scmp.ge.s32.totalorder %s513_s12, 1 }
  0x15   : > { %p153_p1 = scmp.lt.s32.totalorder %s513_s12, 3  ;;  %s118_s5 = scalar_lea.sflag [#allocation3], %s589_s23 }
  0x16   : > { %s383_s6 = sshra.s32 %s128_s29, 4  ;;  %p387_p3 = pneg %p598_p13  ;;  %s384_s6 = int_to_ptr.hbm [resolvable:$true] %s383_s6 }
  0x17   : > { %s385_s7 = scalar_lea.hbm %s384_s6, 8  ;;  %s390_s16 = scalar_lea.hbm %s690_s0, 16 }
  0x18   : > { %p386_p2 = scmp.ne.s32.totalorder %s384_s6, %s385_s7  ;;  %p391_p5 = scmp.lt.s32.totalorder %s384_s6, %s690_s0 }
  0x19   : > { %p392_p8 = scmp.lt.s32.totalorder %s390_s16, %s385_s7 }
  0x1a   : > { %p388_p4 = pnand %p387_p3, %p386_p2 }
  0x1b   : > { %p393_p10 = por %p392_p8, %p391_p5 }
  0x1c   : > { %p389_p7 = pneg %p388_p4 }
  0x1e   : > { %p394_p9 = pnand %p393_p10, %p389_p7 }
  0x20   : > { %397 = shalt.err (!%p394_p9)
}
  0x21   : > { %341 = dma.hbm_to_vmem [thread:$0]  (!%p598_p13), %s128_s29, 128, %s130_s3, %s118_s5  }
  0x22   : > { %p622_p2 = pnand %p324_p0, %p153_p1  ;;  %s144_s30 = scalar_lea.hbm %s691_s1, %s321_s24 }
  0x23   : > { %s146_s6 = sshll.u32 %s144_s30, 4  ;;  %s140_s7 = scalar_lea.vmem [#allocation5], %s320_s25  ;;  %s147_s6 = int_to_ptr.hbm [resolvable:$true] %s146_s6 }
  0x24   : > { %s148_s8 = sshll.u32 %s140_s7, 4  ;;  %s137_s14 = scalar_lea.sflag [#allocation6], %s589_s23  ;;  %s149_s8 = int_to_ptr.vmem [resolvable:$true] %s148_s8 }
  0x25   : > { %s413_s16 = sshra.s32 %s147_s6, 4  ;;  %s420_s5 = scalar_lea.hbm %s691_s1, 16  ;;  %s414_s16 = int_to_ptr.hbm [resolvable:$true] %s413_s16 }
  0x26   : > { %s415_s17 = scalar_lea.hbm %s414_s16, 8  ;;  %p421_p4 = scmp.lt.s32.totalorder %s414_s16, %s691_s1 }
  0x27   : > { %p416_p9 = scmp.ne.s32.totalorder %s414_s16, %s415_s17  ;;  %p422_p7 = scmp.lt.s32.totalorder %s420_s5, %s415_s17 }
  0x29   : > { %p418_p0 = pnand %p416_p9, %p387_p3  ;;  %p423_p5 = por %p422_p7, %p421_p4 }
  0x2b   : > { %p419_p1 = pneg %p418_p0 }
  0x2d   : > { %p424_p8 = pnand %p423_p5, %p419_p1 }
  0x2f   : > { %427 = shalt.err (!%p424_p8)
}
  0x30   : > { %344 = dma.hbm_to_vmem [thread:$0]  (!%p598_p13), %s147_s6, 128, %s149_s8, %s137_s14  }
  0x31   : > { %157 = sbr.rel (%p622_p2) target bundleno = 72 (0x48), region = 28  ;;  %s644_s23 = sand.u32 (!%p622_p2), 1, %s505_s10  }
  0x32   : > { %s325_s25 = sshll.u32 (!%p622_p2), %s644_s23, 3  ;;  %s160_s27 = scalar_lea.sflag (!%p622_p2), [#allocation3], %s644_s23 }
  0x33   : > { %s163_s28 = scalar_lea.vmem (!%p622_p2), [#allocation2], %s325_s25 }
  0x36   : > { %488 = dma.done.wait (%p573_p6), %s160_s27, 128  }
  0x37   : > { %490 = vsyncadd (%p573_p6), %s160_s27, 4294967168  ;;  %s170_s4 = scalar_lea.sflag [#allocation6], %s644_s23  ;;  %s173_s30 = scalar_lea.vmem [#allocation5], %s325_s25 }
  0x38   : > { %492 = dma.done.wait (%p573_p6), %s170_s4, 128  }
  0x39   : > { %494 = vsyncadd (%p573_p6), %s170_s4, 4294967168  ;;  %s329_s26 = sshll.u32 %s551_s13, 3  ;;  %v200_v0 = vld [vmem:[%s163_s28] sm:$0xff]  ;;  %v201_v1 = vld [vmem:[%s173_s30] sm:$0xff]  ;;  %s199_s14 = scalar_lea.vmem [#allocation7], %s325_s25 }
  0x3a   : > { %v202_v2 = vmul.f32 %v201_v1, %v200_v0  ;;  %s219_s8 = scalar_lea.hbm %s692_s2, %s329_s26  ;;  %s221_s16 = sshll.u32 %s199_s14, 4  ;;  %s222_s16 = int_to_ptr.vmem [resolvable:$true] %s221_s16 }
  0x3b   : > { %s223_s17 = sshll.u32 %s219_s8, 4  ;;  %s209_s20 = scalar_lea.sflag [#allocation4], %s644_s23  ;;  %s224_s17 = int_to_ptr.hbm [resolvable:$true] %s223_s17 }
  0x3c   : > { %v203_v3 = vsub.f32 1.0, %v202_v2  ;;  %s457_s29 = sshra.s32 %s224_s17, 4  ;;  %s463_s19 = scalar_lea.hbm %s692_s2, 16  ;;  %s458_s29 = int_to_ptr.hbm [resolvable:$true] %s457_s29 }
  0x3d   : > { %s459_s13 = scalar_lea.hbm %s458_s29, 8  ;;  %p464_p10 = scmp.lt.s32.totalorder %s458_s29, %s692_s2 }
  0x3e   : > { %v204_v4 = vmax.f32 %v203_v3, 0.0  ;;  %p460_p6 = scmp.ne.s32.totalorder %s458_s29, %s459_s13  ;;  %p465_p2 = scmp.lt.s32.totalorder %s463_s19, %s459_s13 }
  0x40   : > { %v205_v5 = vmul.f32 %v204_v4, %v204_v4  ;;  %p461_p13 = pnand %p460_p6, %p580_p11  ;;  %p466_p9 = por %p465_p2, %p464_p10 }
  0x42   : > { %207 = vst [vmem:[%s199_s14] sm:$0xff] %v205_v5  ;;  %p462_p3 = pneg %p461_p13 }
  0x44   : > { %p467_p0 = pnand %p466_p9, %p462_p3 }
  0x46   : > { %470 = shalt.err (!%p467_p0)
}
  0x47   : > { %336 = dma.vmem_to_hbm [thread:$0]  (%p580_p11), %s222_s16, 128, %s224_s17, %s209_s20  }
  0x48 PF: > { %s235_s23 = sand.u32 1, %s501_s9   ;;  %p699_p1 = scmp.ge.s32.totalorder %s513_s12, 2 }
  0x49   : > { %s236_s27 = scalar_lea.sflag [#allocation4], %s235_s23 }
  0x4a   : > { %p346_p4 = pnand %p699_p1, %p584_p12 }
  0x4c   : > { %p347_p7 = pneg %p346_p4 }
  0x4e   : > { %496 = dma.done.wait (%p347_p7), %s236_s27, 128  }
  0x4f   : > { %498 = vsyncadd (%p347_p7), %s236_s27, 4294967168  ;;  %p18_p5 = scmp.ge.s32.totalorder %s555_s15, 4   ;;  %s700_s9 = smov %s505_s10 }
  0x50   : > { %s701_s10 = smov %s509_s11  ;;  %s702_s11 = smov %s567_s18 }
  0x51   : > { %s703_s12 = smov %s555_s15  ;;  %20 = sbr.rel (!%p18_p5) target bundleno = 7 (0x7), region = 86 }
  0x56   :  { %242 = vsyncpa [#allocation3], 1 }
  0x57   :  { %244 = vsyncpa [#allocation3 + $0x1], 1 }
  0x58   :  { %245 = vsyncpa [#allocation6], 1 }
  0x59   :  { %247 = vsyncpa [#allocation6 + $0x1], 1 }
  0x5a   :  { %248 = vsyncpa [#allocation4], 1 }
  0x5b   :  { %250 = vsyncpa [#allocation4 + $0x1], 1 }

</bundles_post_ra>
